<compile_context>
chip_gen: v7x
topology: tpu7x:2x2x1
jax: 0.10.0
libtpu: 0.0.40
codegen_flags: <defaults>
</compile_context>

<pallas_src>
import functools

import jax
import jax.numpy as jnp
from jax.experimental import pallas as pl
from jax.experimental.pallas import tpu as pltpu


_SUB = 8                    # sublanes per vreg
_LANE = 128                 # lanes per vreg
_QUANT = _SUB * _LANE       # tile_n granularity -> C = tile_n // 8 stays lane-aligned


def _cdiv(a, b):
    return -(-a // b)


def _round_up(a, b):
    return _cdiv(a, b) * b


def _num_tensorcores():
    """Best-effort TensorCores-per-chip (1 on v5e/v6e, 2 on multi-TC parts)."""
    try:
        info = pltpu.get_tpu_info()
        for attr in ("num_tensorcores", "tensorcores_per_chip", "num_cores"):
            v = getattr(info, attr, None)
            if isinstance(v, int) and 0 < v <= 8:
                return v
    except Exception:
        pass
    try:
        v = getattr(jax.devices()[0], "num_cores", None)
        if isinstance(v, int) and 0 < v <= 8:
            return v
    except Exception:
        pass
    return 1


def _focal_loss_kernel(w_ref, p1_ref, y_ref, out_ref, acc_ref, *,
                       alpha, gamma, n_total, n_inner, tile_n, need_mask):
    o = pl.program_id(0)
    i = pl.program_id(1)

    @pl.when(i == 0)
    def _():
        acc_ref[...] = jnp.zeros_like(acc_ref)

    w = w_ref[...]      # (M, 8, C) f32
    p1 = p1_ref[...]    # (M, 8, C) f32   == p_preds[:, :, 1], relaid out
    y = y_ref[...]      # (8, C)   f32

    # calculate_pbar restricted to the class-1 column:
    #   logits[n] = sum_m weights_l[n, m] * p_preds[n, m, 1]
    # Leading-axis (M) sum -> plain cross-vreg VALU adds, no XLU reduce.
    logits = jnp.sum(w * p1, axis=0)                         # (8, C)

    # torchvision.ops.sigmoid_focal_loss with a fused transcendental chain:
    #   e = exp(-|x|) is shared between the stable BCE log-term and the sigmoid.
    e = jnp.exp(-jnp.abs(logits))
    ce = jnp.maximum(logits, 0.0) - logits * y + jnp.log1p(e)
    inv = 1.0 / (1.0 + e)
    p = jnp.where(logits >= 0.0, inv, e * inv)               # sigmoid(logits)

    # 1 - p_t == 1 - (p*y + (1-p)*(1-y)) == p + y - 2*p*y   (folded)
    one_minus_pt = p + y - 2.0 * p * y

    g = float(gamma)
    if g == 0.0:
        focal = jnp.ones_like(one_minus_pt)
    elif g.is_integer() and 0.0 < g <= 8.0:
        focal = one_minus_pt
        for _ in range(int(g) - 1):
            focal = focal * one_minus_pt
    else:
        focal = jnp.power(one_minus_pt, jnp.float32(g))

    loss = ce * focal
    if alpha >= 0:
        # alpha*y + (1-alpha)*(1-y) == (1-alpha) + (2*alpha-1)*y   (folded)
        loss = ((1.0 - alpha) + (2.0 * alpha - 1.0) * y) * loss

    if need_mask:
        base = (o * n_inner + i) * tile_n

        @pl.when(base + tile_n <= n_total)       # interior tile: plain accumulate
        def _():
            acc_ref[...] += loss

        @pl.when(base + tile_n > n_total)        # only the boundary tile pays the mask
        def _():
            sub, c = loss.shape
            idx = (jax.lax.broadcasted_iota(jnp.int32, (sub, c), 0) * c
                   + jax.lax.broadcasted_iota(jnp.int32, (sub, c), 1))
            acc_ref[...] += jnp.where(base + idx < n_total, loss, 0.0)
    else:
        acc_ref[...] += loss

    @pl.when(i == pl.num_programs(1) - 1)
    def _():
        out_ref[0, 0] = jnp.sum(acc_ref[...])


def focal_loss_pallas(p_preds, weights_l, y_labels, *, alpha=1.0, gamma=2.0,
                      reduction="mean", tile_n_cap=8192):
    """p_preds: (N, M, K) f32, weights_l: (N, M) f32, y_labels: (N,) int/float."""
    # TODO(synk): reduction='none' would need an (N,)-shaped output; only mean/sum here.
    assert reduction in ("mean", "sum")
    N, M, K = p_preds.shape
    assert K >= 2, "p_bar[:, 1] requires at least 2 classes"

    # --- tiling / grid ----------------------------------------------------------
    num_cores = _num_tensorcores()

    # Keep the double-buffered block footprint well under every generation's default
    # scoped-VMEM limit (v5e: 16 MiB) so no vmem_limit_bytes override is needed.
    vmem_budget = 10 << 20
    per_sample_bytes = (4 * M + 3) * 4            # w,p1 double-buffered + y + acc
    cap = max(_QUANT, (min(int(tile_n_cap), vmem_budget // per_sample_bytes)
                       // _QUANT) * _QUANT)

    n_par = max(1, min(num_cores, _cdiv(N, _QUANT)))      # don't shard tiny N
    tile_n = min(cap, _round_up(_cdiv(N, n_par), _QUANT))
    n_tiles = _cdiv(N, tile_n)
    n_par = max(1, min(n_par, n_tiles))
    n_inner = _cdiv(n_tiles, n_par)
    n_pad = n_par * n_inner * tile_n
    pad = n_pad - N
    need_mask = pad != 0
    C = tile_n // _SUB
    S = n_pad // C

    # --- layout plumbing (cheap, O(N*M)) ----------------------------------------
    # One fused copy per tensor: class-1 slice, transpose to lane-dense (M, N),
    # pad only along the lane (N) axis, fold N into (sublane=8, lane=C) tiles.
    def _relayout(x_nm):                                  # (N, M) -> (M, S, C)
        x = jnp.transpose(x_nm.astype(jnp.float32), (1, 0))
        if pad:
            x = jnp.pad(x, ((0, 0), (0, pad)))
        return x.reshape(M, S, C)

    w3 = _relayout(weights_l)
    p13 = _relayout(p_preds[:, :, 1])
    yf = y_labels.astype(jnp.float32)
    if pad:
        yf = jnp.pad(yf, ((0, pad),))
    y3 = yf.reshape(S, C)

    kernel = functools.partial(
        _focal_loss_kernel, alpha=float(alpha), gamma=float(gamma),
        n_total=N, n_inner=n_inner, tile_n=tile_n, need_mask=need_mask)

    blk3 = lambda o, i: (0, o * n_inner + i, 0)   # block index along the folded N axis
    blk2 = lambda o, i: (o * n_inner + i, 0)

    # TODO(synk): on multi-TensorCore parts, verify the leading "parallel" axis really
    # shards across cores; if not, switch it to pltpu.CORE_PARALLEL.
    partials = pl.pallas_call(
        kernel,
        out_shape=jax.ShapeDtypeStruct((n_par, 1), jnp.float32),
        grid=(n_par, n_inner),
        in_specs=[
            pl.BlockSpec((M, _SUB, C), blk3),     # weights_l tile     (M, 8, C)
            pl.BlockSpec((M, _SUB, C), blk3),     # p_preds[:, :, 1]   (M, 8, C)
            pl.BlockSpec((_SUB, C), blk2),        # labels             (8, C)
        ],
        out_specs=pl.BlockSpec((1, 1), lambda o, i: (o, 0),
                               memory_space=pltpu.SMEM),
        scratch_shapes=[pltpu.VMEM((_SUB, C), jnp.float32)],
        compiler_params=pltpu.CompilerParams(
            dimension_semantics=("parallel", "arbitrary")),
    )(w3, p13, y3)

    total = jnp.sum(partials)
    if reduction == "mean":
        return total / jnp.float32(N)
    return total


def _focal_loss_ref(p_preds, weights_l, y_labels, alpha=1.0, gamma=2.0, reduction="mean"):
    """Pure-JAX reference mirroring the PyTorch module."""
    p_bar = jnp.einsum("nm,nmk->nk", weights_l, p_preds)
    logits = p_bar[:, 1]
    y = y_labels.astype(jnp.float32)
    p = jax.nn.sigmoid(logits)
    ce = jnp.maximum(logits, 0.0) - logits * y + jnp.log1p(jnp.exp(-jnp.abs(logits)))
    p_t = p * y + (1.0 - p) * (1.0 - y)
    loss = ce * (1.0 - p_t) ** gamma
    if alpha >= 0:
        loss = (alpha * y + (1.0 - alpha) * (1.0 - y)) * loss
    return jnp.mean(loss) if reduction == "mean" else jnp.sum(loss)


if __name__ == "__main__":
    key = jax.random.PRNGKey(0)
    k1, k2, k3 = jax.random.split(key, 3)

    def make(N, M, K):
        p = jax.nn.softmax(jax.random.normal(k1, (N, M, K), dtype=jnp.float32), axis=-1)
        w = jax.nn.softmax(jax.random.normal(k2, (N, M), dtype=jnp.float32), axis=-1)
        y = jax.random.bernoulli(k3, 0.5, (N,)).astype(jnp.int32)
        return p, w, y

    # 1) Module-consistent small shapes: N samples, M ensemble members, K=2 classes.
    pa, wa, ya = make(256, 8, 2)
    out = jax.block_until_ready(
        focal_loss_pallas(pa, wa, ya, alpha=1.0, gamma=2.0, reduction="mean"))
    ref = _focal_loss_ref(pa, wa, ya, alpha=1.0, gamma=2.0)
    assert jnp.allclose(out, ref, rtol=1e-5, atol=1e-6), (out, ref)

    # 2) Non-aligned N (exercises the padding + boundary-mask path).
    pb, wb, yb = make(300, 8, 2)
    out2 = jax.block_until_ready(
        focal_loss_pallas(pb, wb, yb, alpha=1.0, gamma=2.0, reduction="mean"))
    ref2 = _focal_loss_ref(pb, wb, yb, alpha=1.0, gamma=2.0)
    assert jnp.allclose(out2, ref2, rtol=1e-5, atol=1e-6), (out2, ref2)

    # 3) Multi-tile grid + non-trivial alpha + 'sum' reduction (tile_n_cap=1024 forces
    #    several grid steps, so the VMEM accumulator and the mask path are exercised).
    pc, wc, yc = make(2500, 8, 2)
    out3 = jax.block_until_ready(
        focal_loss_pallas(pc, wc, yc, alpha=0.25, gamma=2.0,
                          reduction="sum", tile_n_cap=1024))
    ref3 = _focal_loss_ref(pc, wc, yc, alpha=0.25, gamma=2.0, reduction="sum")
    assert jnp.allclose(out3, ref3, rtol=1e-5, atol=1e-5), (out3, ref3)

    print("KERNEL_OK")
</pallas_src>

<mosaic_0001>
module attributes {stable_mosaic.version = 11 : i64} {
  func.func @_focal_loss_kernel(%arg0: i32, %arg1: i32, %arg2: memref<8x8x128xf32, #tpu.memory_space<vmem>>, %arg3: memref<8x8x128xf32, #tpu.memory_space<vmem>>, %arg4: memref<8x128xf32, #tpu.memory_space<vmem>>, %arg5: memref<1x1xf32, #tpu.memory_space<smem>>, %arg6: memref<8x128xf32, #tpu.memory_space<vmem>>) attributes {dimension_semantics = [#tpu.dimension_semantics<parallel>, #tpu.dimension_semantics<arbitrary>], iteration_bounds = array<i64: 1, 1>, scalar_prefetch = 0 : i64, scratch_operands = 1 : i64, tpu.core_type = #tpu.core_type<tc>, window_params = [{transform_indices = @transform_0, window_bounds = array<i64: 8, 8, 128>}, {transform_indices = @transform_1, window_bounds = array<i64: 8, 8, 128>}, {transform_indices = @transform_2, window_bounds = array<i64: 8, 128>}, {transform_indices = @transform_3, window_bounds = array<i64: 1, 1>}]} {
    %c0_i32 = arith.constant 0 : i32
    %0 = arith.cmpi eq, %arg1, %c0_i32 : i32
    %1 = arith.extui %0 : i1 to i32
    %c0_i32_0 = arith.constant 0 : i32
    %2 = arith.cmpi ne, %1, %c0_i32_0 : i32
    scf.if %2 {
      %cst_23 = arith.constant 0.000000e+00 : f32
      %52 = vector.broadcast %cst_23 : f32 to vector<8x128xf32>
      %c0_24 = arith.constant 0 : index
      %c0_25 = arith.constant 0 : index
      %53 = vector.load %arg6[%c0_24, %c0_25] : memref<8x128xf32, #tpu.memory_space<vmem>>, vector<8x128xf32>
      tpu.vector_store %arg6[%c0_24, %c0_25], %52 {strides = array<i32>} : memref<8x128xf32, #tpu.memory_space<vmem>>, vector<8x128xf32>,
    } else {
    }
    %c0 = arith.constant 0 : index
    %c0_1 = arith.constant 0 : index
    %c0_2 = arith.constant 0 : index
    %3 = vector.load %arg2[%c0, %c0_1, %c0_2] : memref<8x8x128xf32, #tpu.memory_space<vmem>>, vector<8x8x128xf32>
    %c0_3 = arith.constant 0 : index
    %c0_4 = arith.constant 0 : index
    %c0_5 = arith.constant 0 : index
    %4 = vector.load %arg3[%c0_3, %c0_4, %c0_5] : memref<8x8x128xf32, #tpu.memory_space<vmem>>, vector<8x8x128xf32>
    %c0_6 = arith.constant 0 : index
    %c0_7 = arith.constant 0 : index
    %5 = vector.load %arg4[%c0_6, %c0_7] : memref<8x128xf32, #tpu.memory_space<vmem>>, vector<8x128xf32>
    %6 = arith.mulf %3, %4 : vector<8x8x128xf32>
    %cst = arith.constant dense<0.000000e+00> : vector<8x128xf32>
    %7 = vector.multi_reduction <add>, %6, %cst [0] : vector<8x8x128xf32> to vector<8x128xf32>
    %8 = math.absf %7 : vector<8x128xf32>
    %cst_8 = arith.constant 0.000000e+00 : f32
    %9 = vector.broadcast %cst_8 : f32 to vector<8x128xf32>
    %10 = arith.subf %9, %8 : vector<8x128xf32>
    %11 = math.exp %10 : vector<8x128xf32>
    %cst_9 = arith.constant 0.000000e+00 : f32
    %12 = vector.broadcast %cst_9 : f32 to vector<8x128xf32>
    %13 = arith.maximumf %7, %12 : vector<8x128xf32>
    %14 = arith.mulf %7, %5 : vector<8x128xf32>
    %15 = arith.subf %13, %14 : vector<8x128xf32>
    %16 = math.log1p %11 : vector<8x128xf32>
    %17 = arith.addf %15, %16 : vector<8x128xf32>
    %cst_10 = arith.constant 1.000000e+00 : f32
    %18 = vector.broadcast %cst_10 : f32 to vector<8x128xf32>
    %19 = arith.addf %18, %11 : vector<8x128xf32>
    %cst_11 = arith.constant 1.000000e+00 : f32
    %20 = vector.broadcast %cst_11 : f32 to vector<8x128xf32>
    %21 = arith.divf %20, %19 : vector<8x128xf32>
    %cst_12 = arith.constant 0.000000e+00 : f32
    %22 = vector.broadcast %cst_12 : f32 to vector<8x128xf32>
    %23 = arith.cmpf oge, %7, %22 : vector<8x128xf32>
    %24 = arith.mulf %11, %21 : vector<8x128xf32>
    %25 = arith.select %23, %21, %24 : vector<8x128xi1>, vector<8x128xf32>
    %26 = arith.addf %25, %5 : vector<8x128xf32>
    %cst_13 = arith.constant 2.000000e+00 : f32
    %27 = vector.broadcast %cst_13 : f32 to vector<8x128xf32>
    %28 = arith.mulf %27, %25 : vector<8x128xf32>
    %29 = arith.mulf %28, %5 : vector<8x128xf32>
    %30 = arith.subf %26, %29 : vector<8x128xf32>
    %31 = arith.mulf %30, %30 : vector<8x128xf32>
    %32 = arith.mulf %17, %31 : vector<8x128xf32>
    %cst_14 = arith.constant 1.000000e+00 : f32
    %33 = vector.broadcast %cst_14 : f32 to vector<8x128xf32>
    %34 = arith.mulf %33, %5 : vector<8x128xf32>
    %cst_15 = arith.constant 0.000000e+00 : f32
    %35 = vector.broadcast %cst_15 : f32 to vector<8x128xf32>
    %36 = arith.addf %35, %34 : vector<8x128xf32>
    %37 = arith.mulf %36, %32 : vector<8x128xf32>
    %c1_i32 = arith.constant 1 : i32
    %38 = arith.muli %arg0, %c1_i32 : i32
    %39 = arith.addi %38, %arg1 : i32
    %c1024_i32 = arith.constant 1024 : i32
    %40 = arith.muli %39, %c1024_i32 : i32
    %c1024_i32_16 = arith.constant 1024 : i32
    %41 = arith.addi %40, %c1024_i32_16 : i32
    %c256_i32 = arith.constant 256 : i32
    %42 = arith.cmpi sle, %41, %c256_i32 : i32
    %43 = arith.extui %42 : i1 to i32
    %c0_i32_17 = arith.constant 0 : i32
    %44 = arith.cmpi ne, %43, %c0_i32_17 : i32
    scf.if %44 {
      %c0_23 = arith.constant 0 : index
      %c0_24 = arith.constant 0 : index
      %52 = vector.load %arg6[%c0_23, %c0_24] : memref<8x128xf32, #tpu.memory_space<vmem>>, vector<8x128xf32>
      %53 = arith.addf %52, %37 : vector<8x128xf32>
      %c0_25 = arith.constant 0 : index
      %c0_26 = arith.constant 0 : index
      %54 = vector.load %arg6[%c0_25, %c0_26] : memref<8x128xf32, #tpu.memory_space<vmem>>, vector<8x128xf32>
      tpu.vector_store %arg6[%c0_25, %c0_26], %53 {strides = array<i32>} : memref<8x128xf32, #tpu.memory_space<vmem>>, vector<8x128xf32>,
    } else {
    }
    %c1024_i32_18 = arith.constant 1024 : i32
    %45 = arith.addi %40, %c1024_i32_18 : i32
    %c256_i32_19 = arith.constant 256 : i32
    %46 = arith.cmpi sgt, %45, %c256_i32_19 : i32
    %47 = arith.extui %46 : i1 to i32
    %c0_i32_20 = arith.constant 0 : i32
    %48 = arith.cmpi ne, %47, %c0_i32_20 : i32
    scf.if %48 {
      %52 = tpu.iota {dimensions = array<i32: 0>} : vector<8x128xi32>
      %c128_i32 = arith.constant 128 : i32
      %53 = vector.broadcast %c128_i32 : i32 to vector<8x128xi32>
      %54 = arith.muli %52, %53 : vector<8x128xi32>
      %55 = tpu.iota {dimensions = array<i32: 1>} : vector<8x128xi32>
      %56 = arith.addi %54, %55 : vector<8x128xi32>
      %c0_23 = arith.constant 0 : index
      %c0_24 = arith.constant 0 : index
      %57 = vector.load %arg6[%c0_23, %c0_24] : memref<8x128xf32, #tpu.memory_space<vmem>>, vector<8x128xf32>
      %58 = vector.broadcast %40 : i32 to vector<8x128xi32>
      %59 = arith.addi %58, %56 : vector<8x128xi32>
      %c256_i32_25 = arith.constant 256 : i32
      %60 = vector.broadcast %c256_i32_25 : i32 to vector<8x128xi32>
      %61 = arith.cmpi slt, %59, %60 : vector<8x128xi32>
      %cst_26 = arith.constant 0.000000e+00 : f32
      %62 = vector.broadcast %cst_26 : f32 to vector<8x128xf32>
      %63 = arith.select %61, %37, %62 : vector<8x128xi1>, vector<8x128xf32>
      %64 = arith.addf %57, %63 : vector<8x128xf32>
      %c0_27 = arith.constant 0 : index
      %c0_28 = arith.constant 0 : index
      %65 = vector.load %arg6[%c0_27, %c0_28] : memref<8x128xf32, #tpu.memory_space<vmem>>, vector<8x128xf32>
      tpu.vector_store %arg6[%c0_27, %c0_28], %64 {strides = array<i32>} : memref<8x128xf32, #tpu.memory_space<vmem>>, vector<8x128xf32>,
    } else {
    }
    %c0_i32_21 = arith.constant 0 : i32
    %49 = arith.cmpi eq, %arg1, %c0_i32_21 : i32
    %50 = arith.extui %49 : i1 to i32
    %c0_i32_22 = arith.constant 0 : i32
    %51 = arith.cmpi ne, %50, %c0_i32_22 : i32
    scf.if %51 {
      %c0_23 = arith.constant 0 : index
      %c0_24 = arith.constant 0 : index
      %52 = vector.load %arg6[%c0_23, %c0_24] : memref<8x128xf32, #tpu.memory_space<vmem>>, vector<8x128xf32>
      %53 = vector.shape_cast %52 : vector<8x128xf32> to vector<1x8x128xf32>
      %cst_25 = arith.constant dense<0.000000e+00> : vector<1xf32>
      %54 = vector.multi_reduction <add>, %53, %cst_25 [1, 2] : vector<1x8x128xf32> to vector<1xf32>
      %55 = vector.shape_cast %54 : vector<1xf32> to vector<1x1x1xf32>
      %56 = vector.extract %55[0, 0, 0] : f32 from vector<1x1x1xf32>
      %c0_26 = arith.constant 0 : index
      %c0_27 = arith.constant 0 : index
      %57 = memref.load %arg5[%c0_26, %c0_27] : memref<1x1xf32, #tpu.memory_space<smem>>
      memref.store %56, %arg5[%c0_26, %c0_27] : memref<1x1xf32, #tpu.memory_space<smem>>
    } else {
    }
    return
  }
  func.func @transform_0(%arg0: i32, %arg1: i32) -> (i32, i32, i32) {
    %c1_i32 = arith.constant 1 : i32
    %0 = arith.muli %arg0, %c1_i32 : i32
    %1 = arith.addi %0, %arg1 : i32
    %c0_i32 = arith.constant 0 : i32
    %c0_i32_0 = arith.constant 0 : i32
    %c0_i32_1 = arith.constant 0 : i32
    return %c0_i32, %1, %c0_i32_0 : i32, i32, i32
  }
  func.func @transform_1(%arg0: i32, %arg1: i32) -> (i32, i32, i32) {
    %c1_i32 = arith.constant 1 : i32
    %0 = arith.muli %arg0, %c1_i32 : i32
    %1 = arith.addi %0, %arg1 : i32
    %c0_i32 = arith.constant 0 : i32
    %c0_i32_0 = arith.constant 0 : i32
    %c0_i32_1 = arith.constant 0 : i32
    return %c0_i32, %1, %c0_i32_0 : i32, i32, i32
  }
  func.func @transform_2(%arg0: i32, %arg1: i32) -> (i32, i32) {
    %c1_i32 = arith.constant 1 : i32
    %0 = arith.muli %arg0, %c1_i32 : i32
    %1 = arith.addi %0, %arg1 : i32
    %c0_i32 = arith.constant 0 : i32
    %c0_i32_0 = arith.constant 0 : i32
    return %1, %c0_i32 : i32, i32
  }
  func.func @transform_3(%arg0: i32, %arg1: i32) -> (i32, i32) {
    %c0_i32 = arith.constant 0 : i32
    %c0_i32_0 = arith.constant 0 : i32
    return %arg0, %c0_i32 : i32, i32
  }
}

</mosaic_0001>

<bundles_post_ra>
// kernel: tpu_custom_call.1
= control target key start
LH: loop header
LB: loop body
LE: loop exit
PB: predicated region body
PF: predicated region fallthrough
CT: control target
= control target key end

     0   :  { %8 = vsyncpa [#allocation4], 0  ;;  %s368_s0 = inlined_call_operand.hbm [shape: f32[8,8,128], index: 0, kind: input, shape index: {}]   ;;  %s369_s1 = inlined_call_operand.hbm [shape: f32[8,8,128], index: 1, kind: input, shape index: {}]   ;;  %s370_s2 = inlined_call_operand.hbm [shape: f32[8,128], index: 2, kind: input, shape index: {}]   ;;  %s371_s3 = inlined_call_operand.hbm [shape: f32[1,1], index: 3, kind: output, shape index: {}]  }
   0x1   :  { %9 = vsyncpa [#allocation7], 0 }
   0x2   :  { %10 = vsyncpa [#allocation5], 0  ;;  %s287_s12 = smov [#allocation6]   ;;  %s288_s14 = smov [#allocation3]  }
   0x3   :  { %s34_s13 = sshll.u32 %s287_s12, 4  ;;  %s19_s15 = sshll.u32 %s288_s14, 4  ;;  %s35_s13 = int_to_ptr.vmem [resolvable:$true] %s34_s13  ;;  %s313_s15 = int_to_ptr.vmem [resolvable:$true] %s19_s15 }
   0x4   :  { %s205_s18 = scalar_lea.hbm %s369_s1, 1024 }
   0x5   :  { %p206_p0 = scmp.ne.s32.totalorder %s369_s1, %s205_s18  ;;  %p209_p1 = scmp.lt.u32.totalorder %s205_s18, %s369_s1 }
   0x7   :  { %p211_p2 = pnand %p209_p1, %p206_p0 }
   0x9   :  { %214 = shalt.err (!%p211_p2)
}
   0xa   :  { %s215_s23 = scalar_lea.vmem %s35_s13, 1024  ;;  %p220_p4 = scmp.lt.s32.totalorder %s35_s13, %s35_s13 }
   0xb   :  { %p216_p3 = scmp.ne.s32.totalorder %s35_s13, %s215_s23  ;;  %p221_p5 = scmp.lt.s32.totalorder %s215_s23, %s215_s23 }
   0xd   :  { %p222_p6 = por %p221_p5, %p220_p4 }
   0xf   :  { %p223_p7 = pnand %p222_p6, %p216_p3 }
  0x11   :  { %226 = shalt.err (!%p223_p7)
}
  0x12   :  { %s289_s24 = smov 128   ;;  %s290_s25 = smov 8  }
  0x13   :  { %40 = dma.hbm_to_vmem [thread:$0]  %s369_s1, 1024, %s35_s13, [#allocation7], %s289_s24, %s289_s24, %s290_s25  }
  0x14   :  { %s227_s30 = scalar_lea.hbm %s368_s0, 1024 }
  0x15   :  { %p228_p8 = scmp.ne.s32.totalorder %s368_s0, %s227_s30  ;;  %p231_p9 = scmp.lt.u32.totalorder %s227_s30, %s368_s0 }
  0x17   :  { %p233_p10 = pnand %p231_p9, %p228_p8 }
  0x19   :  { %236 = shalt.err (!%p233_p10)
}
  0x1a   :  { %s237_s8 = scalar_lea.vmem %s313_s15, 1024  ;;  %p242_p12 = scmp.lt.s32.totalorder %s313_s15, %s313_s15 }
  0x1b   :  { %p238_p11 = scmp.ne.s32.totalorder %s313_s15, %s237_s8  ;;  %p243_p13 = scmp.lt.s32.totalorder %s237_s8, %s237_s8 }
  0x1d   :  { %p244_p0 = por %p243_p13, %p242_p12 }
  0x1f   :  { %p245_p1 = pnand %p244_p0, %p238_p11 }
  0x21   :  { %248 = shalt.err (!%p245_p1)
}
  0x22   :  { %25 = dma.hbm_to_vmem [thread:$0]  %s368_s0, 1024, %s313_s15, [#allocation4], %s289_s24, %s289_s24, %s290_s25  }
  0x23   :  { %s291_s10 = smov [#allocation8]   ;;  %s249_s14 = scalar_lea.hbm %s370_s2, 128 }
  0x24   :  { %s50_s11 = sshll.u32 %s291_s10, 4  ;;  %p250_p2 = scmp.ne.s32.totalorder %s370_s2, %s249_s14  ;;  %s51_s11 = int_to_ptr.vmem [resolvable:$true] %s50_s11 }
  0x25   :  { %p253_p3 = scmp.lt.u32.totalorder %s249_s14, %s370_s2 }
  0x27   :  { %p255_p4 = pnand %p253_p3, %p250_p2 }
  0x29   :  { %258 = shalt.err (!%p255_p4)
}
  0x2a   :  { %s259_s20 = scalar_lea.vmem %s51_s11, 128  ;;  %p264_p6 = scmp.lt.s32.totalorder %s51_s11, %s51_s11 }
  0x2b   :  { %p260_p5 = scmp.ne.s32.totalorder %s51_s11, %s259_s20  ;;  %p265_p7 = scmp.lt.s32.totalorder %s259_s20, %s259_s20 }
  0x2d   :  { %p266_p8 = por %p265_p7, %p264_p6 }
  0x2f   :  { %p267_p9 = pnand %p266_p8, %p260_p5 }
  0x31   :  { %270 = shalt.err (!%p267_p9)
}
  0x32   :  { %53 = dma.hbm_to_vmem [thread:$0]  %s370_s2, 128, %s51_s11, [#allocation7]  }
  0x33   :  { %281 = dma.done.wait [#allocation4], 1024  }
  0x34   :  { %282 = vsyncadd [#allocation4], 4294966272 }
  0x35   :  { %283 = dma.done.wait [#allocation7], 1152  }
  0x36   :  { %284 = vsyncadd [#allocation7], 4294966144  ;;  %v71_v0 = vld [vmem:[#allocation3] sm:$0xff]  ;;  %v72_v1 = vld [vmem:[#allocation3 + $0x8] sm:$0xff]  ;;  %v148_v39 = vlaneseq  ;;  %s271_s23 = scalar_lea.hbm %s371_s3, 16 }
  0x37   :  { %v73_v2 = vld [vmem:[#allocation3 + $0x10] sm:$0xff]  ;;  %v74_v3 = vld [vmem:[#allocation3 + $0x18] sm:$0xff]  ;;  %v79_v4 = vld [vmem:[#allocation6] sm:$0xff]  ;;  %p272_p10 = scmp.ne.s32.totalorder %s371_s3, %s271_s23  ;;  %p275_p11 = scmp.lt.u32.totalorder %s271_s23, %s371_s3 }
  0x38   :  { %v80_v5 = vld [vmem:[#allocation6 + $0x8] sm:$0xff]  ;;  %v81_v6 = vld [vmem:[#allocation6 + $0x10] sm:$0xff]  ;;  %v82_v7 = vld [vmem:[#allocation6 + $0x18] sm:$0xff]  ;;  %v88_v8 = vmul.f32 %v79_v4, %v71_v0  ;;  %v149_v48 = vshrl.u32 %v148_v39, 7  ;;  %v152_v55 = vand.u32 127, %v148_v39 }
  0x39   :  { %v89_v9 = vmul.f32 %v80_v5, %v72_v1  ;;  %v90_v10 = vmul.f32 %v81_v6, %v73_v2  ;;  %v75_v11 = vld [vmem:[#allocation3 + $0x20] sm:$0xff]  ;;  %v91_v13 = vmul.f32 %v82_v7, %v74_v3  ;;  %v76_v15 = vld [vmem:[#allocation3 + $0x28] sm:$0xff]  ;;  %v77_v19 = vld [vmem:[#allocation3 + $0x30] sm:$0xff]  ;;  %p277_p12 = pnand %p275_p11, %p272_p10 }
  0x3a   :  { %v83_v12 = vld [vmem:[#allocation6 + $0x20] sm:$0xff]  ;;  %v84_v16 = vld [vmem:[#allocation6 + $0x28] sm:$0xff]  ;;  %v85_v20 = vld [vmem:[#allocation6 + $0x30] sm:$0xff]  ;;  %v150_v54 = vmul.u32 128, %v149_v48 }
  0x3b   :  { %v96_v14 = vadd.f32 %v89_v9, %v88_v8  ;;  %v92_v17 = vmul.f32 %v83_v12, %v75_v11  ;;  %v93_v21 = vmul.f32 %v84_v16, %v76_v15  ;;  %v78_v23 = vld [vmem:[#allocation3 + $0x38] sm:$0xff]  ;;  %v94_v25 = vmul.f32 %v85_v20, %v77_v19  ;;  %v87_v37 = vld [vmem:[#allocation8] sm:$0xff] }
  0x3c   :  { %v86_v24 = vld [vmem:[#allocation6 + $0x38] sm:$0xff]  ;;  %v153_v59 = vadd.s32 %v152_v55, %v150_v54 }
  0x3d   :  { %v97_v18 = vadd.f32 %v96_v14, %v90_v10  ;;  %v95_v27 = vmul.f32 %v86_v24, %v78_v23 }
  0x3e   :  { %vm157_vm2 = vcmp.lt.s32.totalorder %v153_v59, 256 }
  0x3f   :  { %v98_v22 = vadd.f32 %v97_v18, %v91_v13 }
  0x41   :  { %v99_v26 = vadd.f32 %v98_v22, %v92_v17 }
  0x43   :  { %v100_v28 = vadd.f32 %v99_v26, %v93_v21 }
  0x45   :  { %v101_v29 = vadd.f32 %v100_v28, %v94_v25 }
  0x47   :  { %v102_v30 = vadd.f32 %v101_v29, %v95_v27 }
  0x49   :  { %v103_v31 = vand.u32 2147483647, %v102_v30  ;;  %v107_v43 = vmax.f32 %v102_v30, 0.0  ;;  %v108_v44 = vmul.f32 %v102_v30, %v87_v37  ;;  %vm123_vm0 = vcmp.ge.f32.partialorder %v102_v30, 0.0 }
  0x4b   :  { %v104_v32 = vsub.f32 0.0, %v103_v31  ;;  %v109_v50 = vsub.f32 %v107_v43, %v108_v44 }
  0x4d   :  { %v105_v33 = vmul.f32 1.442695, %v104_v32 }
  0x4f   :  { %199 = vpow2.f32 %v105_v33 }
  0x59   :  { %v200_v34 = vpop.eup %199 }
  0x5a   :  { %v110_v35 = vadd.f32 1.0, %v200_v34  ;;  %v113_v36 = vmul.f32 -0.5, %v200_v34  ;;  %v116_v40 = vand.u32 2147483647, %v200_v34 }
  0x5c   :  { %201 = vlog2.f32 %v110_v35  ;;  %v114_v38 = vadd.f32 1.0, %v113_v36  ;;  %vm117_vm1 = vcmp.lt.f32.partialorder %v116_v40, 0.0004427343 }
  0x5d   :  { %203 = vrcp.f32 %v110_v35 }
  0x5e   :  { %v115_v46 = vmul.f32 %v200_v34, %v114_v38 }
  0x66   :  { %v202_v41 = vpop.eup %201 }
  0x67   :  { %v204_v42 = vpop.eup %203  ;;  %v112_v45 = vmul.f32 0.6931472, %v202_v41 }
  0x68   :  { %v124_v47 = vmul.f32 %v204_v42, %v200_v34 }
  0x69   :  { %v118_v53 = vsel %vm117_vm1, %v115_v46, %v112_v45 }
  0x6a   :  { %v125_v49 = vsel %vm123_vm0, %v204_v42, %v124_v47  ;;  %v119_v57 = vadd.f32 %v118_v53, %v109_v50 }
  0x6b   :  { %v126_v51 = vadd.f32 %v125_v49, %v87_v37  ;;  %v127_v52 = vmul.f32 2.0, %v125_v49 }
  0x6d   :  { %v128_v56 = vmul.f32 %v127_v52, %v87_v37 }
  0x6f   :  { %v129_v58 = vsub.f32 %v126_v51, %v128_v56 }
  0x71   :  { %v130_v60 = vmul.f32 %v129_v58, %v129_v58 }
  0x73   :  { %v131_v61 = vmul.f32 %v130_v60, %v119_v57 }
  0x75   :  { %v133_v62 = vmul.f32 %v131_v61, %v87_v37 }
  0x77   :  { %v158_v63 = vsel %vm157_vm2, %v133_v62, 0.0 }
  0x78   :  { %165 = vadd.xlane.f32.xlu0 %v158_v63 }
 0x105   :  { %v166_v0 = vpop.xlane.xlu0 %165 }
 0x106   :  { %v167_v1 = vrot.slane %v166_v0, 4 }
 0x108   :  { %v168_v2 = vadd.f32 %v167_v1, %v166_v0 }
 0x10a   :  { %v169_v3 = vrot.slane %v168_v2, 2 }
 0x10c   :  { %v170_v4 = vadd.f32 %v169_v3, %v168_v2 }
 0x10e   :  { %v171_v5 = vrot.slane %v170_v4, 1 }
 0x110   :  { %v172_v6 = vadd.f32 %v171_v5, %v170_v4 }
 0x112   :  { %191 = vpush %v172_v6 }
 0x143   :  { %s192_s2 = spop %191 }
 0x144   :  { %175 = sst [smem:[#allocation9]] %s192_s2 }
 0x145   :  { %280 = shalt.err (!%p277_p12)
}
 0x146   :  { %s292_s28 = smov [#allocation9]  }
 0x147   :  { %183 = dma.smem_to_hbm %s292_s28, 16, %s371_s3, [#allocation5]  }
 0x148   :  { %285 = dma.done.wait [#allocation5], 16  }
 0x149   :  { %286 = vsyncadd [#allocation5], 4294967280 }
 0x14a   :  { %187 = sfence }
 0x14b   :  { %188 = vsyncpa [#allocation4], 1 }
 0x14c   :  { %189 = vsyncpa [#allocation7], 1 }
 0x14d   :  { %190 = vsyncpa [#allocation5], 1 }

</bundles_post_ra>
